<compile_context>
chip_gen: v6e
topology: v6e:2x2x1
jax: 0.10.0
libtpu: 0.0.40
codegen_flags: <defaults>
</compile_context>

<pallas_src>
import math

import jax
import jax.numpy as jnp
from jax.experimental import pallas as pl
from jax.experimental.pallas import tpu as pltpu

INPUT_SIZE = 640
HIDDEN1 = 128
HIDDEN2 = 128
HIDDEN3 = 64
HIDDEN4 = 64
LATENT = 30

LANE_PAD = 128                 # lane-dense padded latent width
# Fused head output (3 x 128 lanes):
#   block 0 (  0:128): mean   at lanes 0:30   (aligned with eps for latent math)
#   block 1 (128:256): logvar at lanes 0:30   (aligned with eps for latent math)
#   block 2 (256:384): mean   at lanes 30:60, logvar at lanes 60:90 (packed)
HEAD_OUT = 3 * LANE_PAD
PACKED_OUT = LANE_PAD          # packed output: latent|mean|logvar in 128 lanes


def _round_up(x, m):
    return (x + m - 1) // m * m


def _encoder_kernel(x_ref,
                    w1_ref, b1_ref, w2_ref, b2_ref,
                    w3_ref, b3_ref, w4_ref, b4_ref,
                    wh_ref, bh_ref, eps_ref, out_ref):
    cdt = w1_ref.dtype  # MXU input dtype (bf16 or f32); epilogue stays f32

    def dense_relu(h, w_ref, b_ref):
        y = jnp.dot(h, w_ref[...], preferred_element_type=jnp.float32) + b_ref[...]
        return jnp.maximum(y, 0.0).astype(cdt)

    h = dense_relu(x_ref[...], w1_ref, b1_ref)     # [TB, 128]
    h = dense_relu(h, w2_ref, b2_ref)              # [TB, 128]
    h = dense_relu(h, w3_ref, b3_ref)              # [TB, 64]
    h = dense_relu(h, w4_ref, b4_ref)              # [TB, 64]

    # Fused head: one [64, 384] matmul emits aligned + pre-packed mean/logvar.
    head = jnp.dot(h, wh_ref[...], preferred_element_type=jnp.float32) + bh_ref[...]
    mean_a = head[:, :LANE_PAD]                    # mean   at lanes 0:30, rest 0
    logvar_a = head[:, LANE_PAD:2 * LANE_PAD]      # logvar at lanes 0:30, rest 0
    packed_mv = head[:, 2 * LANE_PAD:]             # mean@30:60, logvar@60:90, rest 0

    # Reparameterization (f32). eps pad lanes are zero -> latent pad lanes zero.
    eps = eps_ref[...].astype(jnp.float32)
    latent_a = eps * jnp.exp(0.5 * logvar_a) + mean_a   # latent at lanes 0:30

    # Single lane-dense unmasked store: latent | mean | logvar packed in 128 lanes.
    out_ref[...] = (latent_a + packed_mv).astype(out_ref.dtype)


def encoder_forward(x, params, eps, *, compute_dtype=jnp.bfloat16, block_rows=1024):
    """x: [B, 640], eps: [B, 30]. Returns (latent, mean, logvar), each [B, 30] f32.

    compute_dtype controls the MXU input dtype for x / weights / eps (default
    bf16; accumulation, biases and the exp/reparameterization epilogue are f32).
    Pass compute_dtype=jnp.float32 for bit-accurate f32 matmuls.
    """
    B = x.shape[0]

    # Tile selection:
    #  * as large as block_rows (default 1024 rows: ~85% of HBM roofline,
    #    ~5 MiB double-buffered bf16 footprint, far under v7x's 64 MiB VMEM),
    #  * but capped so the grid has >=2 steps when the batch allows it, so the
    #    "parallel" batch axis actually shards across v7x's two TensorCores.
    half = _round_up(pl.cdiv(B, 2), 8)
    TB = max(8, min(block_rows, _round_up(B, 8), half))
    Bp = _round_up(B, TB)

    # Avoid wrapper-side full-array copies of x where possible: cast only when
    # the dtype differs, pad only when B is not tile-aligned. Callers that keep
    # x in compute_dtype with B a multiple of 8 pay zero extra HBM traffic here.
    xp = x if x.dtype == compute_dtype else x.astype(compute_dtype)
    if Bp != B:
        xp = jnp.pad(xp, ((0, Bp - B), (0, 0)))

    # eps: lane-pad to 128 (keeps the latent math lane-aligned) but carry it in
    # compute_dtype (bf16 by default) to halve its read traffic.
    eps_p = jnp.pad(eps.astype(compute_dtype),
                    ((0, Bp - B), (0, LANE_PAD - LATENT)))

    # Fused, zero-padded head weights (see HEAD_OUT layout comment above).
    wh = jnp.zeros((HIDDEN4, HEAD_OUT), jnp.float32)
    wh = wh.at[:, :LATENT].set(params["wm"])                                  # aligned mean
    wh = wh.at[:, LANE_PAD:LANE_PAD + LATENT].set(params["wv"])               # aligned logvar
    wh = wh.at[:, 2 * LANE_PAD + LATENT:2 * LANE_PAD + 2 * LATENT].set(params["wm"])   # packed mean
    wh = wh.at[:, 2 * LANE_PAD + 2 * LATENT:2 * LANE_PAD + 3 * LATENT].set(params["wv"])  # packed logvar
    bh = jnp.zeros((1, HEAD_OUT), jnp.float32)
    bh = bh.at[:, :LATENT].set(params["bm"])
    bh = bh.at[:, LANE_PAD:LANE_PAD + LATENT].set(params["bv"])
    bh = bh.at[:, 2 * LANE_PAD + LATENT:2 * LANE_PAD + 2 * LATENT].set(params["bm"])
    bh = bh.at[:, 2 * LANE_PAD + 2 * LATENT:2 * LANE_PAD + 3 * LATENT].set(params["bv"])

    # Weights in compute dtype (bf16 halves HBM traffic / native MXU path);
    # biases stay f32 (added to the f32 accumulator).
    w1 = params["w1"].astype(compute_dtype)
    w2 = params["w2"].astype(compute_dtype)
    w3 = params["w3"].astype(compute_dtype)
    w4 = params["w4"].astype(compute_dtype)
    wh = wh.astype(compute_dtype)

    grid = (Bp // TB,)

    def batch_spec(width):
        return pl.BlockSpec((TB, width), lambda i: (i, 0))

    def resident(shape):
        # Constant index map -> block stays resident in VMEM across grid steps.
        return pl.BlockSpec(shape, lambda i: (0, 0))

    in_specs = [
        batch_spec(INPUT_SIZE),                                   # x tile
        resident((INPUT_SIZE, HIDDEN1)), resident((1, HIDDEN1)),  # W1, b1
        resident((HIDDEN1, HIDDEN2)),    resident((1, HIDDEN2)),  # W2, b2
        resident((HIDDEN2, HIDDEN3)),    resident((1, HIDDEN3)),  # W3, b3
        resident((HIDDEN3, HIDDEN4)),    resident((1, HIDDEN4)),  # W4, b4
        resident((HIDDEN4, HEAD_OUT)),   resident((1, HEAD_OUT)), # fused head
        batch_spec(LANE_PAD),                                     # eps tile
    ]

    packed = pl.pallas_call(
        _encoder_kernel,
        out_shape=jax.ShapeDtypeStruct((Bp, PACKED_OUT), jnp.float32),
        grid=grid,
        in_specs=in_specs,
        out_specs=batch_spec(PACKED_OUT),
        compiler_params=pltpu.CompilerParams(
            dimension_semantics=("parallel",),
            vmem_limit_bytes=32 * 1024 * 1024),
    )(xp,
      w1, params["b1"], w2, params["b2"],
      w3, params["b3"], w4, params["b4"],
      wh, bh, eps_p)

    latent = packed[:B, :LATENT]
    mean = packed[:B, LATENT:2 * LATENT]
    logvar = packed[:B, 2 * LATENT:3 * LATENT]
    return latent, mean, logvar


def _kaiming_like_linear(key, fan_in, fan_out):
    # PyTorch default nn.Linear init: U(-1/sqrt(fan_in), 1/sqrt(fan_in)).
    kw, kb = jax.random.split(key)
    bound = 1.0 / math.sqrt(fan_in)
    w = jax.random.uniform(kw, (fan_in, fan_out), jnp.float32, -bound, bound)
    b = jax.random.uniform(kb, (1, fan_out), jnp.float32, -bound, bound)
    return w, b


def _xavier_linear(key, fan_in, fan_out):
    # xavier_uniform_ on weight, PyTorch-default init on bias.
    kw, kb = jax.random.split(key)
    limit = math.sqrt(6.0 / (fan_in + fan_out))
    w = jax.random.uniform(kw, (fan_in, fan_out), jnp.float32, -limit, limit)
    bound = 1.0 / math.sqrt(fan_in)
    b = jax.random.uniform(kb, (1, fan_out), jnp.float32, -bound, bound)
    return w, b


def init_params(key):
    keys = jax.random.split(key, 6)
    w1, b1 = _kaiming_like_linear(keys[0], INPUT_SIZE, HIDDEN1)
    w2, b2 = _kaiming_like_linear(keys[1], HIDDEN1, HIDDEN2)
    w3, b3 = _kaiming_like_linear(keys[2], HIDDEN2, HIDDEN3)
    w4, b4 = _kaiming_like_linear(keys[3], HIDDEN3, HIDDEN4)
    wm, bm = _xavier_linear(keys[4], HIDDEN4, LATENT)
    wv, bv = _xavier_linear(keys[5], HIDDEN4, LATENT)
    return {"w1": w1, "b1": b1, "w2": w2, "b2": b2,
            "w3": w3, "b3": b3, "w4": w4, "b4": b4,
            "wm": wm, "bm": bm, "wv": wv, "bv": bv}


def reference_forward(x, params, eps):
    h1 = jax.nn.relu(x @ params["w1"] + params["b1"])
    h2 = jax.nn.relu(h1 @ params["w2"] + params["b2"])
    h3 = jax.nn.relu(h2 @ params["w3"] + params["b3"])
    h4 = jax.nn.relu(h3 @ params["w4"] + params["b4"])
    mean = h4 @ params["wm"] + params["bm"]
    logvar = h4 @ params["wv"] + params["bv"]
    latent = eps * jnp.exp(0.5 * logvar) + mean
    return latent, mean, logvar


if __name__ == "__main__":
    key = jax.random.PRNGKey(0)
    k_param, k_x, k_eps = jax.random.split(key, 3)
    params = init_params(k_param)

    # Case 1: tiny batch (single grid step), exact f32 compute, tight tolerance.
    B = 8
    x = jax.random.normal(k_x, (B, INPUT_SIZE), jnp.float32)
    eps = jax.random.normal(k_eps, (B, LATENT), jnp.float32)  # torch.randn_like(std)
    latent, mean, logvar = encoder_forward(x, params, eps,
                                           compute_dtype=jnp.float32)
    jax.block_until_ready((latent, mean, logvar))
    rl, rm, rv = reference_forward(x, params, eps)
    assert jnp.allclose(latent, rl, atol=1e-4, rtol=1e-4)
    assert jnp.allclose(mean, rm, atol=1e-4, rtol=1e-4)
    assert jnp.allclose(logvar, rv, atol=1e-4, rtol=1e-4)

    # Case 2: multi-step batch grid with ragged tail (40 rows, 16-row tiles), f32.
    B2 = 40
    x2 = jax.random.normal(jax.random.PRNGKey(1), (B2, INPUT_SIZE), jnp.float32)
    eps2 = jax.random.normal(jax.random.PRNGKey(2), (B2, LATENT), jnp.float32)
    l2, m2, v2 = encoder_forward(x2, params, eps2,
                                 compute_dtype=jnp.float32, block_rows=16)
    jax.block_until_ready((l2, m2, v2))
    rl2, rm2, rv2 = reference_forward(x2, params, eps2)
    assert jnp.allclose(l2, rl2, atol=1e-4, rtol=1e-4)
    assert jnp.allclose(m2, rm2, atol=1e-4, rtol=1e-4)
    assert jnp.allclose(v2, rv2, atol=1e-4, rtol=1e-4)

    # Case 3: default bf16 MXU path (f32 accumulate + f32 epilogue), 2 grid steps
    # (exercises the v7x two-TensorCore split), loose tolerance.
    # NOTE: bf16 rounds x / weights / eps per layer — fine for inference; pass
    # compute_dtype=jnp.float32 where full mean/logvar precision is needed.
    B3 = 64
    x3 = jax.random.normal(jax.random.PRNGKey(3), (B3, INPUT_SIZE), jnp.float32)
    eps3 = jax.random.normal(jax.random.PRNGKey(4), (B3, LATENT), jnp.float32)
    l3, m3, v3 = encoder_forward(x3, params, eps3)   # default bf16
    jax.block_until_ready((l3, m3, v3))
    rl3, rm3, rv3 = reference_forward(x3, params, eps3)
    assert jnp.allclose(l3, rl3, atol=1e-1, rtol=1e-1)
    assert jnp.allclose(m3, rm3, atol=1e-1, rtol=1e-1)
    assert jnp.allclose(v3, rv3, atol=1e-1, rtol=1e-1)

    print("KERNEL_OK")
</pallas_src>

<mosaic_0001>
module attributes {stable_mosaic.version = 11 : i64} {
  func.func @_encoder_kernel(%arg0: i32, %arg1: memref<8x640xf32, #tpu.memory_space<vmem>>, %arg2: memref<640x128xf32, #tpu.memory_space<vmem>>, %arg3: memref<1x128xf32, #tpu.memory_space<vmem>>, %arg4: memref<128x128xf32, #tpu.memory_space<vmem>>, %arg5: memref<1x128xf32, #tpu.memory_space<vmem>>, %arg6: memref<128x64xf32, #tpu.memory_space<vmem>>, %arg7: memref<1x64xf32, #tpu.memory_space<vmem>>, %arg8: memref<64x64xf32, #tpu.memory_space<vmem>>, %arg9: memref<1x64xf32, #tpu.memory_space<vmem>>, %arg10: memref<64x384xf32, #tpu.memory_space<vmem>>, %arg11: memref<1x384xf32, #tpu.memory_space<vmem>>, %arg12: memref<8x128xf32, #tpu.memory_space<vmem>>, %arg13: memref<8x128xf32, #tpu.memory_space<vmem>>) attributes {dimension_semantics = [#tpu.dimension_semantics<parallel>], iteration_bounds = array<i64: 1>, scalar_prefetch = 0 : i64, scratch_operands = 0 : i64, tpu.core_type = #tpu.core_type<tc>, window_params = [{transform_indices = @transform_0, window_bounds = array<i64: 8, 640>}, {pipeline_mode = #tpu.pipeline_mode<synchronous>, transform_indices = @transform_1, window_bounds = array<i64: 640, 128>}, {pipeline_mode = #tpu.pipeline_mode<synchronous>, transform_indices = @transform_2, window_bounds = array<i64: 1, 128>}, {pipeline_mode = #tpu.pipeline_mode<synchronous>, transform_indices = @transform_3, window_bounds = array<i64: 128, 128>}, {pipeline_mode = #tpu.pipeline_mode<synchronous>, transform_indices = @transform_4, window_bounds = array<i64: 1, 128>}, {pipeline_mode = #tpu.pipeline_mode<synchronous>, transform_indices = @transform_5, window_bounds = array<i64: 128, 64>}, {pipeline_mode = #tpu.pipeline_mode<synchronous>, transform_indices = @transform_6, window_bounds = array<i64: 1, 64>}, {pipeline_mode = #tpu.pipeline_mode<synchronous>, transform_indices = @transform_7, window_bounds = array<i64: 64, 64>}, {pipeline_mode = #tpu.pipeline_mode<synchronous>, transform_indices = @transform_8, window_bounds = array<i64: 1, 64>}, {pipeline_mode = #tpu.pipeline_mode<synchronous>, transform_indices = @transform_9, window_bounds = array<i64: 64, 384>}, {pipeline_mode = #tpu.pipeline_mode<synchronous>, transform_indices = @transform_10, window_bounds = array<i64: 1, 384>}, {transform_indices = @transform_11, window_bounds = array<i64: 8, 128>}, {transform_indices = @transform_12, window_bounds = array<i64: 8, 128>}]} {
    %c0 = arith.constant 0 : index
    %c0_0 = arith.constant 0 : index
    %0 = vector.load %arg1[%c0, %c0_0] : memref<8x640xf32, #tpu.memory_space<vmem>>, vector<8x640xf32>
    %c0_1 = arith.constant 0 : index
    %c0_2 = arith.constant 0 : index
    %1 = vector.load %arg2[%c0_1, %c0_2] : memref<640x128xf32, #tpu.memory_space<vmem>>, vector<640x128xf32>
    %cst = arith.constant dense<0.000000e+00> : vector<8x128xf32>
    %2 = tpu.matmul %0, %1, %cst {dimension_numbers = #tpu.dot_dimension_numbers<[1], [0], [0], [1], [0, 0, 1, 1], [], []>} : vector<8x640xf32>, vector<640x128xf32>, vector<8x128xf32> -> vector<8x128xf32>
    %c0_3 = arith.constant 0 : index
    %c0_4 = arith.constant 0 : index
    %3 = vector.load %arg3[%c0_3, %c0_4] : memref<1x128xf32, #tpu.memory_space<vmem>>, vector<1x128xf32>
    %4 = vector.broadcast %3 : vector<1x128xf32> to vector<8x128xf32>
    %5 = arith.addf %2, %4 : vector<8x128xf32>
    %cst_5 = arith.constant 0.000000e+00 : f32
    %6 = vector.broadcast %cst_5 : f32 to vector<8x128xf32>
    %7 = arith.maximumf %5, %6 : vector<8x128xf32>
    %c0_6 = arith.constant 0 : index
    %c0_7 = arith.constant 0 : index
    %8 = vector.load %arg4[%c0_6, %c0_7] : memref<128x128xf32, #tpu.memory_space<vmem>>, vector<128x128xf32>
    %cst_8 = arith.constant dense<0.000000e+00> : vector<8x128xf32>
    %9 = tpu.matmul %7, %8, %cst_8 {dimension_numbers = #tpu.dot_dimension_numbers<[1], [0], [0], [1], [0, 0, 1, 1], [], []>} : vector<8x128xf32>, vector<128x128xf32>, vector<8x128xf32> -> vector<8x128xf32>
    %c0_9 = arith.constant 0 : index
    %c0_10 = arith.constant 0 : index
    %10 = vector.load %arg5[%c0_9, %c0_10] : memref<1x128xf32, #tpu.memory_space<vmem>>, vector<1x128xf32>
    %11 = vector.broadcast %10 : vector<1x128xf32> to vector<8x128xf32>
    %12 = arith.addf %9, %11 : vector<8x128xf32>
    %cst_11 = arith.constant 0.000000e+00 : f32
    %13 = vector.broadcast %cst_11 : f32 to vector<8x128xf32>
    %14 = arith.maximumf %12, %13 : vector<8x128xf32>
    %c0_12 = arith.constant 0 : index
    %c0_13 = arith.constant 0 : index
    %15 = vector.load %arg6[%c0_12, %c0_13] : memref<128x64xf32, #tpu.memory_space<vmem>>, vector<128x64xf32>
    %cst_14 = arith.constant dense<0.000000e+00> : vector<8x64xf32>
    %16 = tpu.matmul %14, %15, %cst_14 {dimension_numbers = #tpu.dot_dimension_numbers<[1], [0], [0], [1], [0, 0, 1, 1], [], []>} : vector<8x128xf32>, vector<128x64xf32>, vector<8x64xf32> -> vector<8x64xf32>
    %c0_15 = arith.constant 0 : index
    %c0_16 = arith.constant 0 : index
    %17 = vector.load %arg7[%c0_15, %c0_16] : memref<1x64xf32, #tpu.memory_space<vmem>>, vector<1x64xf32>
    %18 = vector.broadcast %17 : vector<1x64xf32> to vector<8x64xf32>
    %19 = arith.addf %16, %18 : vector<8x64xf32>
    %cst_17 = arith.constant 0.000000e+00 : f32
    %20 = vector.broadcast %cst_17 : f32 to vector<8x64xf32>
    %21 = arith.maximumf %19, %20 : vector<8x64xf32>
    %c0_18 = arith.constant 0 : index
    %c0_19 = arith.constant 0 : index
    %22 = vector.load %arg8[%c0_18, %c0_19] : memref<64x64xf32, #tpu.memory_space<vmem>>, vector<64x64xf32>
    %cst_20 = arith.constant dense<0.000000e+00> : vector<8x64xf32>
    %23 = tpu.matmul %21, %22, %cst_20 {dimension_numbers = #tpu.dot_dimension_numbers<[1], [0], [0], [1], [0, 0, 1, 1], [], []>} : vector<8x64xf32>, vector<64x64xf32>, vector<8x64xf32> -> vector<8x64xf32>
    %c0_21 = arith.constant 0 : index
    %c0_22 = arith.constant 0 : index
    %24 = vector.load %arg9[%c0_21, %c0_22] : memref<1x64xf32, #tpu.memory_space<vmem>>, vector<1x64xf32>
    %25 = vector.broadcast %24 : vector<1x64xf32> to vector<8x64xf32>
    %26 = arith.addf %23, %25 : vector<8x64xf32>
    %cst_23 = arith.constant 0.000000e+00 : f32
    %27 = vector.broadcast %cst_23 : f32 to vector<8x64xf32>
    %28 = arith.maximumf %26, %27 : vector<8x64xf32>
    %c0_24 = arith.constant 0 : index
    %c0_25 = arith.constant 0 : index
    %29 = vector.load %arg10[%c0_24, %c0_25] : memref<64x384xf32, #tpu.memory_space<vmem>>, vector<64x384xf32>
    %cst_26 = arith.constant dense<0.000000e+00> : vector<8x384xf32>
    %30 = tpu.matmul %28, %29, %cst_26 {dimension_numbers = #tpu.dot_dimension_numbers<[1], [0], [0], [1], [0, 0, 1, 1], [], []>} : vector<8x64xf32>, vector<64x384xf32>, vector<8x384xf32> -> vector<8x384xf32>
    %c0_27 = arith.constant 0 : index
    %c0_28 = arith.constant 0 : index
    %31 = vector.load %arg11[%c0_27, %c0_28] : memref<1x384xf32, #tpu.memory_space<vmem>>, vector<1x384xf32>
    %32 = vector.broadcast %31 : vector<1x384xf32> to vector<8x384xf32>
    %33 = arith.addf %30, %32 : vector<8x384xf32>
    %34 = vector.extract_strided_slice %33 {offsets = [0, 0], sizes = [8, 128], strides = [1, 1]} : vector<8x384xf32> to vector<8x128xf32>
    %35 = vector.extract_strided_slice %33 {offsets = [0, 128], sizes = [8, 128], strides = [1, 1]} : vector<8x384xf32> to vector<8x128xf32>
    %36 = vector.extract_strided_slice %33 {offsets = [0, 256], sizes = [8, 128], strides = [1, 1]} : vector<8x384xf32> to vector<8x128xf32>
    %c0_29 = arith.constant 0 : index
    %c0_30 = arith.constant 0 : index
    %37 = vector.load %arg12[%c0_29, %c0_30] : memref<8x128xf32, #tpu.memory_space<vmem>>, vector<8x128xf32>
    %cst_31 = arith.constant 5.000000e-01 : f32
    %38 = vector.broadcast %cst_31 : f32 to vector<8x128xf32>
    %39 = arith.mulf %38, %35 : vector<8x128xf32>
    %40 = math.exp %39 : vector<8x128xf32>
    %41 = arith.mulf %37, %40 : vector<8x128xf32>
    %42 = arith.addf %41, %34 : vector<8x128xf32>
    %43 = arith.addf %42, %36 : vector<8x128xf32>
    %c0_32 = arith.constant 0 : index
    %c0_33 = arith.constant 0 : index
    %44 = vector.load %arg13[%c0_32, %c0_33] : memref<8x128xf32, #tpu.memory_space<vmem>>, vector<8x128xf32>
    tpu.vector_store %arg13[%c0_32, %c0_33], %43 {strides = array<i32>} : memref<8x128xf32, #tpu.memory_space<vmem>>, vector<8x128xf32>,
    return
  }
  func.func @transform_0(%arg0: i32) -> (i32, i32) {
    %c0_i32 = arith.constant 0 : i32
    %c0_i32_0 = arith.constant 0 : i32
    return %arg0, %c0_i32 : i32, i32
  }
  func.func @transform_1(%arg0: i32) -> (i32, i32) {
    %c0_i32 = arith.constant 0 : i32
    %c0_i32_0 = arith.constant 0 : i32
    %c0_i32_1 = arith.constant 0 : i32
    return %c0_i32, %c0_i32_0 : i32, i32
  }
  func.func @transform_2(%arg0: i32) -> (i32, i32) {
    %c0_i32 = arith.constant 0 : i32
    %c0_i32_0 = arith.constant 0 : i32
    %c0_i32_1 = arith.constant 0 : i32
    return %c0_i32, %c0_i32_0 : i32, i32
  }
  func.func @transform_3(%arg0: i32) -> (i32, i32) {
    %c0_i32 = arith.constant 0 : i32
    %c0_i32_0 = arith.constant 0 : i32
    %c0_i32_1 = arith.constant 0 : i32
    return %c0_i32, %c0_i32_0 : i32, i32
  }
  func.func @transform_4(%arg0: i32) -> (i32, i32) {
    %c0_i32 = arith.constant 0 : i32
    %c0_i32_0 = arith.constant 0 : i32
    %c0_i32_1 = arith.constant 0 : i32
    return %c0_i32, %c0_i32_0 : i32, i32
  }
  func.func @transform_5(%arg0: i32) -> (i32, i32) {
    %c0_i32 = arith.constant 0 : i32
    %c0_i32_0 = arith.constant 0 : i32
    %c0_i32_1 = arith.constant 0 : i32
    return %c0_i32, %c0_i32_0 : i32, i32
  }
  func.func @transform_6(%arg0: i32) -> (i32, i32) {
    %c0_i32 = arith.constant 0 : i32
    %c0_i32_0 = arith.constant 0 : i32
    %c0_i32_1 = arith.constant 0 : i32
    return %c0_i32, %c0_i32_0 : i32, i32
  }
  func.func @transform_7(%arg0: i32) -> (i32, i32) {
    %c0_i32 = arith.constant 0 : i32
    %c0_i32_0 = arith.constant 0 : i32
    %c0_i32_1 = arith.constant 0 : i32
    return %c0_i32, %c0_i32_0 : i32, i32
  }
  func.func @transform_8(%arg0: i32) -> (i32, i32) {
    %c0_i32 = arith.constant 0 : i32
    %c0_i32_0 = arith.constant 0 : i32
    %c0_i32_1 = arith.constant 0 : i32
    return %c0_i32, %c0_i32_0 : i32, i32
  }
  func.func @transform_9(%arg0: i32) -> (i32, i32) {
    %c0_i32 = arith.constant 0 : i32
    %c0_i32_0 = arith.constant 0 : i32
    %c0_i32_1 = arith.constant 0 : i32
    return %c0_i32, %c0_i32_0 : i32, i32
  }
  func.func @transform_10(%arg0: i32) -> (i32, i32) {
    %c0_i32 = arith.constant 0 : i32
    %c0_i32_0 = arith.constant 0 : i32
    %c0_i32_1 = arith.constant 0 : i32
    return %c0_i32, %c0_i32_0 : i32, i32
  }
  func.func @transform_11(%arg0: i32) -> (i32, i32) {
    %c0_i32 = arith.constant 0 : i32
    %c0_i32_0 = arith.constant 0 : i32
    return %arg0, %c0_i32 : i32, i32
  }
  func.func @transform_12(%arg0: i32) -> (i32, i32) {
    %c0_i32 = arith.constant 0 : i32
    %c0_i32_0 = arith.constant 0 : i32
    return %arg0, %c0_i32 : i32, i32
  }
}

</mosaic_0001>

<bundles_post_ra>
// kernel: tpu_custom_call.1
= control target key start
LH: loop header
LB: loop body
LE: loop exit
PB: predicated region body
PF: predicated region fallthrough
CT: control target
= control target key end

     0   :  { %17 = vsyncpa [#allocation3], 0  ;;  %s1608_s0 = inlined_call_operand.hbm [shape: f32[8,640], index: 0, kind: input, shape index: {}]   ;;  %s1609_s1 = inlined_call_operand.hbm [shape: f32[640,128], index: 1, kind: input, shape index: {}]   ;;  %s1610_s2 = inlined_call_operand.vmem [shape: f32[1,128], index: 2, kind: input, shape index: {}]   ;;  %s1611_s3 = inlined_call_operand.hbm [shape: f32[128,128], index: 3, kind: input, shape index: {}]   ;;  %s1612_s4 = inlined_call_operand.vmem [shape: f32[1,128], index: 4, kind: input, shape index: {}]   ;;  %s1613_s5 = inlined_call_operand.vmem [shape: f32[128,64], index: 5, kind: input, shape index: {}]   ;;  %s1614_s6 = inlined_call_operand.vmem [shape: f32[1,64], index: 6, kind: input, shape index: {}]   ;;  %s1615_s7 = inlined_call_operand.hbm [shape: f32[64,64], index: 7, kind: input, shape index: {}]   ;;  %s1616_s8 = inlined_call_operand.vmem [shape: f32[1,64], index: 8, kind: input, shape index: {}]   ;;  %s1617_s9 = inlined_call_operand.vmem [shape: f32[64,384], index: 9, kind: input, shape index: {}]   ;;  %s1618_s10 = inlined_call_operand.vmem [shape: f32[1,384], index: 10, kind: input, shape index: {}]   ;;  %s1619_s11 = inlined_call_operand.vmem [shape: f32[8,128], index: 11, kind: input, shape index: {}]   ;;  %s1620_s12 = inlined_call_operand.hbm [shape: f32[8,128], index: 12, kind: output, shape index: {}]  }
   0x1   :  { %18 = vsyncpa [#allocation6], 0 }
   0x2   :  { %19 = vsyncpa [#allocation9], 0 }
   0x3   :  { %20 = vsyncpa [#allocation4], 0  ;;  %s1294_s21 = smov [#allocation5]  }
   0x4   :  { %s36_s22 = sshll.u32 %s1294_s21, 4  ;;  %s37_s22 = int_to_ptr.vmem [resolvable:$true] %s36_s22 }
   0x5   :  { %s1194_s23 = scalar_lea.vmem %s37_s22, 10240  ;;  %p1199_p1 = scmp.lt.s32.totalorder %s37_s22, %s37_s22 }
   0x6   :  { %p1195_p0 = scmp.ne.s32.totalorder %s37_s22, %s1194_s23  ;;  %p1200_p2 = scmp.lt.s32.totalorder %s1194_s23, %s1194_s23 }
   0x8   :  { %p1201_p3 = por %p1200_p2, %p1199_p1 }
   0xa   :  { %p1202_p4 = pnand %p1201_p3, %p1195_p0 }
   0xc   :  { %1205 = shalt.err (!%p1202_p4)
}
   0xd   :  { %s1295_s24 = smov 128   ;;  %s1296_s25 = smov 8  }
   0xe   :  { %42 = dma.hbm_to_vmem [thread:$0]  %s1609_s1, 10240, %s37_s22, [#allocation6], %s1295_s24, %s1295_s24, %s1296_s25  }
   0xf   :  { %s1297_s28 = smov [#allocation2]   ;;  %s1298_s30 = smov [#allocation7]  }
  0x10   :  { %s27_s29 = sshll.u32 %s1297_s28, 4  ;;  %s50_s13 = sshll.u32 %s1298_s30, 4  ;;  %s28_s29 = int_to_ptr.vmem [resolvable:$true] %s27_s29  ;;  %s51_s13 = int_to_ptr.vmem [resolvable:$true] %s50_s13 }
  0x11   :  { %s1214_s14 = scalar_lea.vmem %s28_s29, 640  ;;  %p1219_p6 = scmp.lt.s32.totalorder %s28_s29, %s28_s29 }
  0x12   :  { %p1215_p5 = scmp.ne.s32.totalorder %s28_s29, %s1214_s14  ;;  %p1220_p7 = scmp.lt.s32.totalorder %s1214_s14, %s1214_s14 }
  0x14   :  { %p1221_p8 = por %p1220_p7, %p1219_p6 }
  0x16   :  { %p1222_p9 = pnand %p1221_p8, %p1215_p5 }
  0x18   :  { %1225 = shalt.err (!%p1222_p9)
}
  0x19   :  { %30 = dma.hbm_to_vmem [thread:$0]  %s1608_s0, 640, %s28_s29, [#allocation3]  }
  0x1a   :  { %s1234_s17 = scalar_lea.vmem %s51_s13, 2048  ;;  %p1239_p11 = scmp.lt.s32.totalorder %s51_s13, %s51_s13 }
  0x1b   :  { %p1235_p10 = scmp.ne.s32.totalorder %s51_s13, %s1234_s17  ;;  %p1240_p12 = scmp.lt.s32.totalorder %s1234_s17, %s1234_s17 }
  0x1d   :  { %p1241_p13 = por %p1240_p12, %p1239_p11 }
  0x1f   :  { %p1242_p0 = pnand %p1241_p13, %p1235_p10 }
  0x21   :  { %1245 = shalt.err (!%p1242_p0)
}
  0x22   :  { %56 = dma.hbm_to_vmem [thread:$0]  %s1611_s3, 2048, %s51_s13, [#allocation6], %s1295_s24, %s1295_s24, %s1296_s25  }
  0x23   :  { %s1299_s19 = smov [#allocation8]  }
  0x24   :  { %s68_s20 = sshll.u32 %s1299_s19, 4  ;;  %s69_s20 = int_to_ptr.vmem [resolvable:$true] %s68_s20 }
  0x25   :  { %s1254_s21 = scalar_lea.vmem %s69_s20, 1024  ;;  %p1259_p2 = scmp.lt.s32.totalorder %s69_s20, %s69_s20 }
  0x26   :  { %p1255_p1 = scmp.ne.s32.totalorder %s69_s20, %s1254_s21  ;;  %p1260_p3 = scmp.lt.s32.totalorder %s1254_s21, %s1254_s21 }
  0x28   :  { %p1261_p4 = por %p1260_p3, %p1259_p2 }
  0x2a   :  { %p1262_p5 = pnand %p1261_p4, %p1255_p1 }
  0x2c   :  { %1265 = shalt.err (!%p1262_p5)
}
  0x2d   :  { %74 = dma.hbm_to_vmem [thread:$0]  %s1615_s7, 1024, %s69_s20, [#allocation9], %s1295_s24, %s1295_s24, %s1296_s25  }
  0x2e   :  { %1286 = dma.done.wait [#allocation3], 640  }
  0x2f   :  { %1287 = vsyncadd [#allocation3], 4294966656 }
  0x30   :  { %1288 = dma.done.wait [#allocation6], 12288  }
  0x31   :  { %1289 = vsyncadd [#allocation6], 4294955008 }
  0x32   :  { %1290 = dma.done.wait [#allocation9], 1024  }
  0x33   :  { %1291 = vsyncadd [#allocation9], 4294966272  ;;  %v131_v0 = vld [vmem:[#allocation5 + $0xf8] sm:$0xff]  ;;  %v130_v2 = vld [vmem:[#allocation5 + $0xf0] sm:$0xff]  ;;  %vm1301_vm0 = vmmov 0   ;;  %vm601_vm1 = vcmask 523264  }
  0x34   :  { %v115_v1 = vld [vmem:[#allocation5 + $0x78] sm:$0xff]  ;;  %893 = vmatprep.subr.mxu0 %v131_v0  ;;  %v114_v4 = vld [vmem:[#allocation5 + $0x70] sm:$0xff]  ;;  %v129_v6 = vld [vmem:[#allocation5 + $0xe8] sm:$0xff] }
  0x35   :  { %v163_v3 = vld [vmem:[#allocation5 + $0x1f8] sm:$0xff]  ;;  %894 = vmatpush3.msra.mxu0 %v115_v1  ;;  %v162_v7 = vld [vmem:[#allocation5 + $0x1f0] sm:$0xff]  ;;  %v113_v8 = vld [vmem:[#allocation5 + $0x68] sm:$0xff] }
  0x36   :  { %v147_v5 = vld [vmem:[#allocation5 + $0x178] sm:$0xff]  ;;  %928 = vmatprep.subr.mxu1 %v163_v3  ;;  %895 = vmatprep.subr.mxu0 %v130_v2  ;;  %v146_v9 = vld [vmem:[#allocation5 + $0x170] sm:$0xff]  ;;  %v161_v10 = vld [vmem:[#allocation5 + $0x1e8] sm:$0xff] }
  0x37   :  { %929 = vmatpush3.msra.mxu1 %v147_v5  ;;  %896 = vmatpush3.msra.mxu0 %v114_v4  ;;  %v128_v11 = vld [vmem:[#allocation5 + $0xe0] sm:$0xff]  ;;  %v145_v12 = vld [vmem:[#allocation5 + $0x168] sm:$0xff]  ;;  %v127_v15 = vld [vmem:[#allocation5 + $0xd8] sm:$0xff]  ;;  %v1300_v5 = vmov 0.0  }
  0x38   :  { %930 = vmatprep.subr.mxu1 %v162_v7  ;;  %897 = vmatprep.subr.mxu0 %v129_v6  ;;  %v112_v13 = vld [vmem:[#allocation5 + $0x60] sm:$0xff]  ;;  %v111_v17 = vld [vmem:[#allocation5 + $0x58] sm:$0xff]  ;;  %v126_v19 = vld [vmem:[#allocation5 + $0xd0] sm:$0xff] }
  0x39   :  { %931 = vmatpush3.msra.mxu1 %v146_v9  ;;  %v160_v14 = vld [vmem:[#allocation5 + $0x1e0] sm:$0xff]  ;;  %898 = vmatpush3.msra.mxu0 %v113_v8  ;;  %v159_v18 = vld [vmem:[#allocation5 + $0x1d8] sm:$0xff]  ;;  %v110_v21 = vld [vmem:[#allocation5 + $0x50] sm:$0xff] }
  0x3a   :  { %932 = vmatprep.subr.mxu1 %v161_v10  ;;  %v144_v16 = vld [vmem:[#allocation5 + $0x160] sm:$0xff]  ;;  %899 = vmatprep.subr.mxu0 %v128_v11  ;;  %v143_v20 = vld [vmem:[#allocation5 + $0x158] sm:$0xff]  ;;  %v158_v22 = vld [vmem:[#allocation5 + $0x1d0] sm:$0xff] }
  0x3b   :  { %933 = vmatpush3.msra.mxu1 %v145_v12  ;;  %900 = vmatpush3.msra.mxu0 %v112_v13  ;;  %v125_v23 = vld [vmem:[#allocation5 + $0xc8] sm:$0xff]  ;;  %v142_v24 = vld [vmem:[#allocation5 + $0x150] sm:$0xff]  ;;  %v124_v27 = vld [vmem:[#allocation5 + $0xc0] sm:$0xff] }
  0x3c   :  { %934 = vmatprep.subr.mxu1 %v160_v14  ;;  %901 = vmatprep.subr.mxu0 %v127_v15  ;;  %v109_v25 = vld [vmem:[#allocation5 + $0x48] sm:$0xff]  ;;  %v108_v29 = vld [vmem:[#allocation5 + $0x40] sm:$0xff]  ;;  %v123_v31 = vld [vmem:[#allocation5 + $0xb8] sm:$0xff] }
  0x3d   :  { %935 = vmatpush3.msra.mxu1 %v144_v16  ;;  %902 = vmatpush3.msra.mxu0 %v111_v17  ;;  %v157_v26 = vld [vmem:[#allocation5 + $0x1c8] sm:$0xff]  ;;  %v156_v30 = vld [vmem:[#allocation5 + $0x1c0] sm:$0xff]  ;;  %v107_v33 = vld [vmem:[#allocation5 + $0x38] sm:$0xff] }
  0x3e   :  { %936 = vmatprep.subr.mxu1 %v159_v18  ;;  %903 = vmatprep.subr.mxu0 %v126_v19  ;;  %v141_v28 = vld [vmem:[#allocation5 + $0x148] sm:$0xff]  ;;  %v140_v32 = vld [vmem:[#allocation5 + $0x140] sm:$0xff]  ;;  %v155_v34 = vld [vmem:[#allocation5 + $0x1b8] sm:$0xff] }
  0x3f   :  { %937 = vmatpush3.msra.mxu1 %v143_v20  ;;  %904 = vmatpush3.msra.mxu0 %v110_v21  ;;  %v122_v35 = vld [vmem:[#allocation5 + $0xb0] sm:$0xff]  ;;  %v139_v36 = vld [vmem:[#allocation5 + $0x138] sm:$0xff]  ;;  %v121_v39 = vld [vmem:[#allocation5 + $0xa8] sm:$0xff] }
  0x40   :  { %938 = vmatprep.subr.mxu1 %v158_v22  ;;  %905 = vmatprep.subr.mxu0 %v125_v23  ;;  %v106_v37 = vld [vmem:[#allocation5 + $0x30] sm:$0xff]  ;;  %v105_v41 = vld [vmem:[#allocation5 + $0x28] sm:$0xff]  ;;  %v120_v43 = vld [vmem:[#allocation5 + $0xa0] sm:$0xff] }
  0x41   :  { %939 = vmatpush3.msra.mxu1 %v142_v24  ;;  %906 = vmatpush3.msra.mxu0 %v109_v25  ;;  %v154_v38 = vld [vmem:[#allocation5 + $0x1b0] sm:$0xff]  ;;  %v153_v42 = vld [vmem:[#allocation5 + $0x1a8] sm:$0xff]  ;;  %v104_v45 = vld [vmem:[#allocation5 + $0x20] sm:$0xff] }
  0x42   :  { %940 = vmatprep.subr.mxu1 %v157_v26  ;;  %907 = vmatprep.subr.mxu0 %v124_v27  ;;  %v138_v40 = vld [vmem:[#allocation5 + $0x130] sm:$0xff]  ;;  %v137_v44 = vld [vmem:[#allocation5 + $0x128] sm:$0xff]  ;;  %v152_v46 = vld [vmem:[#allocation5 + $0x1a0] sm:$0xff] }
  0x43   :  { %941 = vmatpush3.msra.mxu1 %v141_v28  ;;  %908 = vmatpush3.msra.mxu0 %v108_v29  ;;  %v119_v47 = vld [vmem:[#allocation5 + $0x98] sm:$0xff]  ;;  %v136_v48 = vld [vmem:[#allocation5 + $0x120] sm:$0xff]  ;;  %v118_v51 = vld [vmem:[#allocation5 + $0x90] sm:$0xff] }
  0x44   :  { %942 = vmatprep.subr.mxu1 %v156_v30  ;;  %909 = vmatprep.subr.mxu0 %v123_v31  ;;  %v103_v49 = vld [vmem:[#allocation5 + $0x18] sm:$0xff]  ;;  %v102_v53 = vld [vmem:[#allocation5 + $0x10] sm:$0xff]  ;;  %v117_v55 = vld [vmem:[#allocation5 + $0x88] sm:$0xff] }
  0x45   :  { %943 = vmatpush3.msra.mxu1 %v140_v32  ;;  %910 = vmatpush3.msra.mxu0 %v107_v33  ;;  %v151_v50 = vld [vmem:[#allocation5 + $0x198] sm:$0xff]  ;;  %v150_v54 = vld [vmem:[#allocation5 + $0x190] sm:$0xff]  ;;  %v101_v57 = vld [vmem:[#allocation5 + $0x8] sm:$0xff] }
  0x46   :  { %944 = vmatprep.subr.mxu1 %v155_v34  ;;  %911 = vmatprep.subr.mxu0 %v122_v35  ;;  %v135_v52 = vld [vmem:[#allocation5 + $0x118] sm:$0xff]  ;;  %v134_v56 = vld [vmem:[#allocation5 + $0x110] sm:$0xff]  ;;  %v149_v58 = vld [vmem:[#allocation5 + $0x188] sm:$0xff] }
  0x47   :  { %945 = vmatpush3.msra.mxu1 %v139_v36  ;;  %912 = vmatpush3.msra.mxu0 %v106_v37  ;;  %v116_v59 = vld [vmem:[#allocation5 + $0x80] sm:$0xff]  ;;  %v133_v62 = vld [vmem:[#allocation5 + $0x108] sm:$0xff]  ;;  %v95_v63 = vld [vmem:[#allocation2] sm:$0xff] }
  0x48   :  { %946 = vmatprep.subr.mxu1 %v154_v38  ;;  %913 = vmatprep.subr.mxu0 %v121_v39  ;;  %v96_v60 = vld [vmem:[#allocation2 + $0x8] sm:$0xff]  ;;  %v98_v2 = vld [vmem:[#allocation2 + $0x18] sm:$0xff]  ;;  %v179_v3 = vld [vmem:[#allocation5 + $0x278] sm:$0xff] }
  0x49   :  { %947 = vmatpush3.msra.mxu1 %v138_v40  ;;  %914 = vmatpush3.msra.mxu0 %v105_v41  ;;  %v100_v61 = vld [vmem:[#allocation5] sm:$0xff]  ;;  %v97_v4 = vld [vmem:[#allocation2 + $0x10] sm:$0xff]  ;;  %v178_v6 = vld [vmem:[#allocation5 + $0x270] sm:$0xff] }
  0x4a   :  { %948 = vmatprep.subr.mxu1 %v153_v42  ;;  %915 = vmatprep.subr.mxu0 %v120_v43  ;;  %v148_v0 = vld [vmem:[#allocation5 + $0x180] sm:$0xff]  ;;  %v177_v7 = vld [vmem:[#allocation5 + $0x268] sm:$0xff]  ;;  %v175_v9 = vld [vmem:[#allocation5 + $0x258] sm:$0xff] }
  0x4b   :  { %949 = vmatpush3.msra.mxu1 %v137_v44  ;;  %916 = vmatpush3.msra.mxu0 %v104_v45  ;;  %v132_v1 = vld [vmem:[#allocation5 + $0x100] sm:$0xff]  ;;  %v174_v10 = vld [vmem:[#allocation5 + $0x250] sm:$0xff]  ;;  %v173_v11 = vld [vmem:[#allocation5 + $0x248] sm:$0xff] }
  0x4c   :  { %950 = vmatprep.subr.mxu1 %v152_v46  ;;  %917 = vmatprep.subr.mxu0 %v119_v47  ;;  %v176_v8 = vld [vmem:[#allocation5 + $0x260] sm:$0xff]  ;;  %v171_v13 = vld [vmem:[#allocation5 + $0x238] sm:$0xff]  ;;  %v170_v14 = vld [vmem:[#allocation5 + $0x230] sm:$0xff] }
  0x4d   :  { %951 = vmatpush3.msra.mxu1 %v136_v48  ;;  %918 = vmatpush3.msra.mxu0 %v103_v49  ;;  %v172_v12 = vld [vmem:[#allocation5 + $0x240] sm:$0xff]  ;;  %v169_v15 = vld [vmem:[#allocation5 + $0x228] sm:$0xff]  ;;  %v167_v17 = vld [vmem:[#allocation5 + $0x218] sm:$0xff] }
  0x4e   :  { %952 = vmatprep.subr.mxu1 %v151_v50  ;;  %919 = vmatprep.subr.mxu0 %v118_v51  ;;  %v168_v16 = vld [vmem:[#allocation5 + $0x220] sm:$0xff]  ;;  %v166_v18 = vld [vmem:[#allocation5 + $0x210] sm:$0xff]  ;;  %v165_v19 = vld [vmem:[#allocation5 + $0x208] sm:$0xff] }
  0x4f   :  { %953 = vmatpush3.msra.mxu1 %v135_v52  ;;  %920 = vmatpush3.msra.mxu0 %v102_v53  ;;  %v164_v20 = vld [vmem:[#allocation5 + $0x200] sm:$0xff]  ;;  %v99_v21 = vld [vmem:[#allocation2 + $0x20] sm:$0xff]  ;;  %v412_v23 = vld [vmem:[#allocation7 + $0x70] sm:$0xff] }
  0x50   :  { %954 = vmatprep.subr.mxu1 %v150_v54  ;;  %921 = vmatprep.subr.mxu0 %v117_v55  ;;  %v413_v22 = vld [vmem:[#allocation7 + $0x78] sm:$0xff]  ;;  %v411_v24 = vld [vmem:[#allocation7 + $0x68] sm:$0xff]  ;;  %v410_v25 = vld [vmem:[#allocation7 + $0x60] sm:$0xff] }
  0x51   :  { %955 = vmatpush3.msra.mxu1 %v134_v56  ;;  %922 = vmatpush3.msra.mxu0 %v101_v57  ;;  %v409_v26 = vld [vmem:[#allocation7 + $0x58] sm:$0xff]  ;;  %v408_v27 = vld [vmem:[#allocation7 + $0x50] sm:$0xff]  ;;  %v407_v28 = vld [vmem:[#allocation7 + $0x48] sm:$0xff] }
  0x52   :  { %956 = vmatprep.subr.mxu1 %v149_v58  ;;  %923 = vmatprep.subr.mxu0 %v116_v59  ;;  %v406_v29 = vld [vmem:[#allocation7 + $0x40] sm:$0xff]  ;;  %v405_v30 = vld [vmem:[#allocation7 + $0x38] sm:$0xff]  ;;  %v404_v31 = vld [vmem:[#allocation7 + $0x30] sm:$0xff] }
  0x53   :  { %251 = vmatprep.mubr.f32.mxu0 %v96_v60  ;;  %924 = vmatpush3.msra.mxu0 %v100_v61  ;;  %v403_v32 = vld [vmem:[#allocation7 + $0x28] sm:$0xff]  ;;  %v402_v33 = vld [vmem:[#allocation7 + $0x20] sm:$0xff]  ;;  %v401_v34 = vld [vmem:[#allocation7 + $0x18] sm:$0xff] }
  0x54   :  { %957 = vmatpush3.msra.mxu1 %v133_v62  ;;  %252 = vmatmul.mubr.f32.vlgmr.msra.gmra.mxu0 %v95_v63  ;;  %v400_v35 = vld [vmem:[#allocation7 + $0x10] sm:$0xff]  ;;  %v399_v36 = vld [vmem:[#allocation7 + $0x8] sm:$0xff]  ;;  %v398_v37 = vld [vmem:[#allocation7] sm:$0xff] }
  0x55   :  { %958 = vmatprep.subr.mxu1 %v148_v0  ;;  %1032 = vmatprep.subr.mxu0 %v1300_v5  ;;  %v507_v38 = vld [vmem:[%s1613_s5 + $0x78] sm:$0xff]  ;;  %v506_v39 = vld [vmem:[%s1613_s5 + $0x70] sm:$0xff]  ;;  %v505_v40 = vld [vmem:[%s1613_s5 + $0x68] sm:$0xff] }
  0x56   :  { %959 = vmatpush3.msra.mxu1 %v132_v1  ;;  %321 = vmatprep.mubr.f32.mxu1 %v98_v2  ;;  %v504_v41 = vld [vmem:[%s1613_s5 + $0x60] sm:$0xff]  ;;  %v503_v42 = vld [vmem:[%s1613_s5 + $0x58] sm:$0xff]  ;;  %v502_v43 = vld [vmem:[%s1613_s5 + $0x50] sm:$0xff] }
  0x57   :  { %1033 = vmatpush3.msra.mxu0 %v179_v3  ;;  %322 = vmatmul.mubr.f32.vlgmr.msra.gmra.mxu1 %v97_v4  ;;  %v501_v44 = vld [vmem:[%s1613_s5 + $0x48] sm:$0xff]  ;;  %v500_v45 = vld [vmem:[%s1613_s5 + $0x40] sm:$0xff]  ;;  %v499_v46 = vld [vmem:[%s1613_s5 + $0x38] sm:$0xff] }
  0x58   :  { %1034 = vmatprep.subr.mxu0 %v1300_v5  ;;  %1064 = vmatprep.mubr.msk.f32.mxu0 %vm1301_vm0, %v1300_v5  ;;  %v498_v47 = vld [vmem:[%s1613_s5 + $0x30] sm:$0xff]  ;;  %v497_v48 = vld [vmem:[%s1613_s5 + $0x28] sm:$0xff]  ;;  %v496_v49 = vld [vmem:[%s1613_s5 + $0x20] sm:$0xff] }
  0x59   :  { %1035 = vmatpush3.msra.mxu0 %v178_v6  ;;  %1067 = vmatprep.subr.mxu1 %v1300_v5  ;;  %v495_v50 = vld [vmem:[%s1613_s5 + $0x18] sm:$0xff]  ;;  %v886_v55 = vld [vmem:[%s1610_s2] ss:$0 sm:$0xff]  ;;  %v494_v0 = vld [vmem:[%s1613_s5 + $0x10] sm:$0xff] }
  0x5a   :  { %1036 = vmatprep.subr.mxu0 %v1300_v5  ;;  %1099 = vmatprep.mubr.msk.f32.mxu1 %vm1301_vm0, %v1300_v5  ;;  %v493_v1 = vld [vmem:[%s1613_s5 + $0x8] sm:$0xff]  ;;  %v492_v2 = vld [vmem:[%s1613_s5] sm:$0xff]  ;;  %v592_v4 = vld [vmem:[#allocation8 + $0x30] sm:$0xff] }
  0x5b   :  { %1037 = vmatpush3.msra.mxu0 %v177_v7  ;;  %1068 = vmatpush3.msra.mxu1 %v413_v22  ;;  %v593_v3 = vld [vmem:[#allocation8 + $0x38] sm:$0xff]  ;;  %v591_v6 = vld [vmem:[#allocation8 + $0x28] sm:$0xff]  ;;  %v590_v7 = vld [vmem:[#allocation8 + $0x20] sm:$0xff] }
  0x5c   :  { %1038 = vmatprep.subr.mxu0 %v1300_v5  ;;  %1069 = vmatprep.subr.mxu1 %v1300_v5  ;;  %v687_v22 = vld [vmem:[%s1617_s9 + $0x58] sm:$0xff] }
  0x5d   :  { %1039 = vmatpush3.msra.mxu0 %v176_v8  ;;  %1070 = vmatpush3.msra.mxu1 %v412_v23  ;;  %v589_v8 = vld [vmem:[#allocation8 + $0x18] sm:$0xff] }
  0x5e   :  { %1040 = vmatprep.subr.mxu0 %v1300_v5  ;;  %1071 = vmatprep.subr.mxu1 %v1300_v5  ;;  %v888_v23 = vld [vmem:[%s1614_s6] ss:$0 sm:$0xff] }
  0x5f   :  { %1041 = vmatpush3.msra.mxu0 %v175_v9  ;;  %1072 = vmatpush3.msra.mxu1 %v411_v24  ;;  %v887_v9 = vld [vmem:[%s1612_s4] ss:$0 sm:$0xff] }
  0x60   :  { %1042 = vmatprep.subr.mxu0 %v1300_v5  ;;  %1073 = vmatprep.subr.mxu1 %v1300_v5 }
  0x61   :  { %1043 = vmatpush3.msra.mxu0 %v174_v10  ;;  %1074 = vmatpush3.msra.mxu1 %v410_v25 }
  0x62   :  { %1044 = vmatprep.subr.mxu0 %v1300_v5  ;;  %1075 = vmatprep.subr.mxu1 %v1300_v5 }
  0x63   :  { %1045 = vmatpush3.msra.mxu0 %v173_v11  ;;  %1076 = vmatpush3.msra.mxu1 %v409_v26 }
  0x64   :  { %1046 = vmatprep.subr.mxu0 %v1300_v5  ;;  %1077 = vmatprep.subr.mxu1 %v1300_v5 }
  0x65   :  { %1047 = vmatpush3.msra.mxu0 %v172_v12  ;;  %1078 = vmatpush3.msra.mxu1 %v408_v27 }
  0x66   :  { %1048 = vmatprep.subr.mxu0 %v1300_v5  ;;  %1079 = vmatprep.subr.mxu1 %v1300_v5 }
  0x67   :  { %1049 = vmatpush3.msra.mxu0 %v171_v13  ;;  %1080 = vmatpush3.msra.mxu1 %v407_v28  ;;  %v697_v28 = vld [vmem:[%s1617_s9 + $0xa8] sm:$0xff] }
  0x68   :  { %1050 = vmatprep.subr.mxu0 %v1300_v5  ;;  %1081 = vmatprep.subr.mxu1 %v1300_v5 }
  0x69   :  { %1051 = vmatpush3.msra.mxu0 %v170_v14  ;;  %1082 = vmatpush3.msra.mxu1 %v406_v29  ;;  %v588_v14 = vld [vmem:[#allocation8 + $0x10] sm:$0xff] }
  0x6a   :  { %1052 = vmatprep.subr.mxu0 %v1300_v5  ;;  %1083 = vmatprep.subr.mxu1 %v1300_v5  ;;  %v695_v29 = vld [vmem:[%s1617_s9 + $0x98] sm:$0xff] }
  0x6b   :  { %1053 = vmatpush3.msra.mxu0 %v169_v15  ;;  %1084 = vmatpush3.msra.mxu1 %v405_v30  ;;  %v587_v15 = vld [vmem:[#allocation8 + $0x8] sm:$0xff] }
  0x6c   :  { %1054 = vmatprep.subr.mxu0 %v1300_v5  ;;  %1085 = vmatprep.subr.mxu1 %v1300_v5  ;;  %v694_v30 = vld [vmem:[%s1617_s9 + $0x90] sm:$0xff] }
  0x6d   :  { %1055 = vmatpush3.msra.mxu0 %v168_v16  ;;  %1086 = vmatpush3.msra.mxu1 %v404_v31  ;;  %v586_v16 = vld [vmem:[#allocation8] sm:$0xff]  ;;  %v692_v31 = vld [vmem:[%s1617_s9 + $0x80] sm:$0xff] }
  0x6e   :  { %1056 = vmatprep.subr.mxu0 %v1300_v5  ;;  %1087 = vmatprep.subr.mxu1 %v1300_v5 }
  0x6f   :  { %1057 = vmatpush3.msra.mxu0 %v167_v17  ;;  %1088 = vmatpush3.msra.mxu1 %v403_v32  ;;  %v698_v17 = vld [vmem:[%s1617_s9 + $0xb0] sm:$0xff]  ;;  %v691_v32 = vld [vmem:[%s1617_s9 + $0x78] sm:$0xff] }
  0x70   :  { %1058 = vmatprep.subr.mxu0 %v1300_v5  ;;  %1089 = vmatprep.subr.mxu1 %v1300_v5 }
  0x71   :  { %1059 = vmatpush3.msra.mxu0 %v166_v18  ;;  %1090 = vmatpush3.msra.mxu1 %v402_v33  ;;  %v699_v18 = vld [vmem:[%s1617_s9 + $0xb8] sm:$0xff]  ;;  %v689_v33 = vld [vmem:[%s1617_s9 + $0x68] sm:$0xff] }
  0x72   :  { %1060 = vmatprep.subr.mxu0 %v1300_v5  ;;  %1091 = vmatprep.subr.mxu1 %v1300_v5 }
  0x73   :  { %1061 = vmatpush3.msra.mxu0 %v165_v19  ;;  %1092 = vmatpush3.msra.mxu1 %v401_v34  ;;  %v696_v19 = vld [vmem:[%s1617_s9 + $0xa0] sm:$0xff] }
  0x74   :  { %1062 = vmatprep.subr.mxu0 %v1300_v5  ;;  %1093 = vmatprep.subr.mxu1 %v1300_v5  ;;  %v688_v34 = vld [vmem:[%s1617_s9 + $0x60] sm:$0xff] }
  0x75   :  { %1063 = vmatpush3.msra.mxu0 %v164_v20  ;;  %1094 = vmatpush3.msra.mxu1 %v400_v35  ;;  %v693_v20 = vld [vmem:[%s1617_s9 + $0x88] sm:$0xff]  ;;  %v686_v35 = vld [vmem:[%s1617_s9 + $0x50] sm:$0xff] }
  0x76   :  { %1065 = vmatmul.mubr.f32.vlgmr.msra.gmra.mxu0 %v99_v21  ;;  %1102 = vmatprep.subr.mxu0 %v1300_v5  ;;  %v690_v21 = vld [vmem:[%s1617_s9 + $0x70] sm:$0xff] }
  0x77   :  { %1134 = vmatprep.mubr.msk.f32.mxu0 %vm1301_vm0, %v1300_v5  ;;  %1095 = vmatprep.subr.mxu1 %v1300_v5 }
  0x78   :  { %1096 = vmatpush3.msra.mxu1 %v399_v36  ;;  %1103 = vmatpush3.msra.mxu0 %v507_v38  ;;  %v685_v36 = vld [vmem:[%s1617_s9 + $0x48] sm:$0xff]  ;;  %v682_v38 = vld [vmem:[%s1617_s9 + $0x30] sm:$0xff] }
  0x79   :  { %1097 = vmatprep.subr.mxu1 %v1300_v5  ;;  %1104 = vmatprep.subr.mxu0 %v1300_v5 }
  0x7a   :  { %1098 = vmatpush3.msra.mxu1 %v398_v37  ;;  %1105 = vmatpush3.msra.mxu0 %v506_v39  ;;  %v683_v37 = vld [vmem:[%s1617_s9 + $0x38] sm:$0xff]  ;;  %v684_v39 = vld [vmem:[%s1617_s9 + $0x40] sm:$0xff] }
  0x7b   :  { %1137 = vmatprep.subr.mxu1 %v1300_v5  ;;  %1106 = vmatprep.subr.mxu0 %v1300_v5 }
  0x7c   :  { %1107 = vmatpush3.msra.mxu0 %v505_v40  ;;  %v680_v40 = vld [vmem:[%s1617_s9 + $0x20] sm:$0xff] }
  0x7d   :  { %1108 = vmatprep.subr.mxu0 %v1300_v5 }
  0x7e   :  { %1109 = vmatpush3.msra.mxu0 %v504_v41  ;;  %v679_v41 = vld [vmem:[%s1617_s9 + $0x18] sm:$0xff] }
  0x7f   :  { %1110 = vmatprep.subr.mxu0 %v1300_v5 }
  0x80   :  { %1111 = vmatpush3.msra.mxu0 %v503_v42  ;;  %v681_v42 = vld [vmem:[%s1617_s9 + $0x28] sm:$0xff] }
  0x81   :  { %1112 = vmatprep.subr.mxu0 %v1300_v5 }
  0x82   :  { %1113 = vmatpush3.msra.mxu0 %v502_v43  ;;  %v677_v43 = vld [vmem:[%s1617_s9 + $0x8] sm:$0xff] }
  0x83   :  { %1114 = vmatprep.subr.mxu0 %v1300_v5 }
  0x84   :  { %1115 = vmatpush3.msra.mxu0 %v501_v44  ;;  %v676_v44 = vld [vmem:[%s1617_s9] sm:$0xff] }
  0x85   :  { %1116 = vmatprep.subr.mxu0 %v1300_v5 }
  0x86   :  { %1117 = vmatpush3.msra.mxu0 %v500_v45  ;;  %v678_v45 = vld [vmem:[%s1617_s9 + $0x10] sm:$0xff] }
  0x87   :  { %1118 = vmatprep.subr.mxu0 %v1300_v5 }
  0x88   :  { %1119 = vmatpush3.msra.mxu0 %v499_v46  ;;  %v889_v46 = vld [vmem:[%s1616_s8] ss:$0 sm:$0xff] }
  0x89   :  { %1120 = vmatprep.subr.mxu0 %v1300_v5 }
  0x8a   :  { %1121 = vmatpush3.msra.mxu0 %v498_v47 }
  0x8b   :  { %1122 = vmatprep.subr.mxu0 %v1300_v5 }
  0x8c   :  { %1123 = vmatpush3.msra.mxu0 %v497_v48 }
  0x8d   :  { %1124 = vmatprep.subr.mxu0 %v1300_v5 }
  0x8e   :  { %1125 = vmatpush3.msra.mxu0 %v496_v49 }
  0x8f   :  { %1126 = vmatprep.subr.mxu0 %v1300_v5 }
  0x90   :  { %1127 = vmatpush3.msra.mxu0 %v495_v50 }
  0x91   :  { %1128 = vmatprep.subr.mxu0 %v1300_v5 }
  0x92   :  { %1129 = vmatpush3.msra.mxu0 %v494_v0 }
  0x93   :  { %1130 = vmatprep.subr.mxu0 %v1300_v5 }
  0x94   :  { %1131 = vmatpush3.msra.mxu0 %v493_v1  ;;  %v861_v1 = vld [vmem:[%s1619_s11] sm:$0xff] }
  0x95   :  { %1132 = vmatprep.subr.mxu0 %v1300_v5 }
  0x96   :  { %1133 = vmatpush3.msra.mxu0 %v492_v2 }
  0x97   :  { %1156 = vmatprep.subr.mxu0 %v1300_v5 }
 0x114   :  { %v925_v51 = vpop.f32.mrf.mxu0 }
 0x116   :  { %v926_v52 = vpop.f32.mrf.mxu0 }
 0x117   :  { %v960_v53 = vpop.f32.mrf.mxu1  ;;  %v927_v54 = vadd.f32 %v926_v52, %v925_v51 }
 0x119   :  { %v961_v56 = vpop.f32.mrf.mxu1  ;;  %v254_v57 = vadd.f32 %v927_v54, %v886_v55 }
 0x11a   :  { %v962_v58 = vadd.f32 %v961_v56, %v960_v53  ;;  %v700_v53 = vld [vmem:[%s1618_s10] sm:$0x7]  ;;  %s1302_s10 = smov [#allocation10]  }
 0x11b   :  { %s875_s16 = sshll.u32 %s1302_s10, 4  ;;  %s876_s16 = int_to_ptr.vmem [resolvable:$true] %s875_s16 }
 0x11c   :  { %v324_v59 = vadd.f32 %v962_v58, %v254_v57  ;;  %s1266_s17 = scalar_lea.vmem %s876_s16, 128  ;;  %p1271_p7 = scmp.lt.s32.totalorder %s876_s16, %s876_s16 }
 0x11d   :  { %p1267_p6 = scmp.ne.s32.totalorder %s876_s16, %s1266_s17  ;;  %p1272_p8 = scmp.lt.s32.totalorder %s1266_s17, %s1266_s17 }
 0x11f   :  { %p1273_p9 = por %p1272_p8, %p1271_p7 }
 0x121   :  { %p1274_p10 = pnand %p1273_p9, %p1267_p6 }
 0x136   :  { %v393_v60 = vpop.f32.mrf.mxu0 }
 0x137   :  { %v394_v61 = vadd.f32 %v393_v60, %v324_v59 }
 0x138   :  { %v1066_v62 = vpop.f32.mrf.mxu0 }
 0x139   :  { %v397_v63 = vmax.f32 %v394_v61, 0.0 }
 0x13b   :  { %1100 = vmatmul.mubr.f32.vlgmr.msra.gmra.mxu1 %v397_v63 }
 0x13c   :  { %1153 = vmatprep.mubr.msk.f32.mxu1 %vm1301_vm0, %v1300_v5  ;;  %1138 = vmatpush3.msra.mxu1 %v593_v3 }
 0x13d   :  { %1139 = vmatprep.subr.mxu1 %v1300_v5 }
 0x13e   :  { %1140 = vmatpush3.msra.mxu1 %v592_v4 }
 0x13f   :  { %1141 = vmatprep.subr.mxu1 %v1300_v5 }
 0x140   :  { %1142 = vmatpush3.msra.mxu1 %v591_v6 }
 0x141   :  { %1143 = vmatprep.subr.mxu1 %v1300_v5 }
 0x142   :  { %1144 = vmatpush3.msra.mxu1 %v590_v7 }
 0x143   :  { %1145 = vmatprep.subr.mxu1 %v1300_v5 }
 0x144   :  { %1146 = vmatpush3.msra.mxu1 %v589_v8 }
 0x145   :  { %1147 = vmatprep.subr.mxu1 %v1300_v5 }
 0x146   :  { %1148 = vmatpush3.msra.mxu1 %v588_v14 }
 0x147   :  { %1149 = vmatprep.subr.mxu1 %v1300_v5 }
 0x148   :  { %1150 = vmatpush3.msra.mxu1 %v587_v15 }
 0x149   :  { %1151 = vmatprep.subr.mxu1 %v1300_v5 }
 0x14a   :  { %1152 = vmatpush3.msra.mxu1 %v586_v16 }
 0x14b   :  { %736 = vmatprep.subr.mxu1 %v698_v17 }
 0x1fb   :  { %v487_v10 = vpop.f32.mrf.mxu1 }
 0x1fc   :  { %v488_v11 = vadd.f32 %v887_v9, %v487_v10 }
 0x1fd   :  { %v1101_v12 = vpop.f32.mrf.mxu1 }
 0x1fe   :  { %v491_v13 = vmax.f32 %v488_v11, 0.0 }
 0x200   :  { %1135 = vmatmul.mubr.f32.vlgmr.msra.gmra.mxu0 %v491_v13 }
 0x201   :  { %1172 = vmatprep.mubr.msk.f32.mxu0 %vm1301_vm0, %v1300_v5  ;;  %1157 = vmatpush3.msra.mxu0 %v699_v18 }
 0x202   :  { %1158 = vmatprep.subr.mxu0 %v1300_v5 }
 0x203   :  { %1159 = vmatpush3.msra.mxu0 %v696_v19 }
 0x204   :  { %1160 = vmatprep.subr.mxu0 %v1300_v5 }
 0x205   :  { %1161 = vmatpush3.msra.mxu0 %v693_v20 }
 0x206   :  { %1162 = vmatprep.subr.mxu0 %v1300_v5 }
 0x207   :  { %1163 = vmatpush3.msra.mxu0 %v690_v21 }
 0x208   :  { %1164 = vmatprep.subr.mxu0 %v1300_v5 }
 0x209   :  { %1165 = vmatpush3.msra.mxu0 %v687_v22 }
 0x20a   :  { %1166 = vmatprep.subr.mxu0 %v1300_v5 }
 0x20b   :  { %1167 = vmatpush3.msra.mxu0 %v684_v39 }
 0x20c   :  { %1168 = vmatprep.subr.mxu0 %v1300_v5 }
 0x20d   :  { %1169 = vmatpush3.msra.mxu0 %v681_v42 }
 0x20e   :  { %1170 = vmatprep.subr.mxu0 %v1300_v5 }
 0x20f   :  { %1171 = vmatpush3.msra.mxu0 %v678_v45 }
 0x2c0   :  { %v581_v24 = vpop.f32.mrf.mxu0 }
 0x2c1   :  { %v582_v25 = vadd.f32 %v888_v23, %v581_v24 }
 0x2c2   :  { %v1136_v26 = vpop.f32.mrf.mxu0 }
 0x2c3   :  { %v585_v27 = vmax.f32 %v582_v25, 0.0 }
 0x2c5   :  { %1154 = vmatmul.mubr.msk.f32.vlgmr.msra.gmra.mxu1 %vm601_vm1, %v585_v27 }
 0x2c6   :  { %737 = vmatpush1.msra.mxu1 %v697_v28  ;;  %784 = vmatprep.mubr.f32.mxu1 %v1300_v5  ;;  %v702_v5 = vlaneseq }
 0x2c7   :  { %738 = vmatprep.subr.mxu1 %v695_v29 }
 0x2c8   :  { %739 = vmatpush1.msra.mxu1 %v694_v30  ;;  %v703_v51 = vshrl.u32 %v702_v5, 7 }
 0x2c9   :  { %740 = vmatprep.subr.mxu1 %v692_v31 }
 0x2ca   :  { %741 = vmatpush1.msra.mxu1 %v691_v32  ;;  %v708_v52 = vsub.s32 1, %v703_v51  ;;  %v704_v62 = vsub.s32 0, %v703_v51  ;;  %v712_v63 = vsub.s32 2, %v703_v51 }
 0x2cb   :  { %742 = vmatprep.subr.mxu1 %v689_v33 }
 0x2cc   :  { %743 = vmatpush1.msra.mxu1 %v688_v34  ;;  %v709_v54 = vrot.slane %v700_v53, %v708_v52  ;;  %v705_v0 = vrot.slane %v700_v53, %v704_v62  ;;  %v713_v2 = vrot.slane %v700_v53, %v712_v63 }
 0x2cd   :  { %744 = vmatprep.subr.mxu1 %v686_v35 }
 0x2ce   :  { %745 = vmatpush1.msra.mxu1 %v685_v36 }
 0x2cf   :  { %746 = vmatprep.subr.mxu1 %v683_v37 }
 0x2d0   :  { %747 = vmatpush1.msra.mxu1 %v682_v38 }
 0x2d1   :  { %748 = vmatprep.subr.mxu1 %v680_v40 }
 0x2d2   :  { %749 = vmatpush1.msra.mxu1 %v679_v41 }
 0x2d3   :  { %750 = vmatprep.subr.mxu1 %v677_v43 }
 0x2d4   :  { %751 = vmatpush1.msra.mxu1 %v676_v44 }
 0x385   :  { %v671_v47 = vpop.f32.mrf.mxu1 }
 0x386   :  { %v672_v48 = vadd.f32 %v889_v46, %v671_v47 }
 0x387   :  { %v1155_v49 = vpop.f32.mrf.mxu1 }
 0x388   :  { %v675_v50 = vmax.f32 %v672_v48, 0.0 }
 0x38a   :  { %891 = vmatmul.mubr.msk.f32.vlgmr.msra.gmra.mxu1 %vm601_vm1, %v675_v50  ;;  %1173 = vmatmul.mubr.msk.f32.vlgmr.msra.gmra.mxu0 %vm601_vm1, %v675_v50 }
 0x44a   :  { %v786_v55 = vpop.f32.mrf.mxu1  ;;  %v857_v56 = vpop.f32.mrf.mxu0 }
 0x44b   :  { %v787_v4 = vadd.f32 %v786_v55, %v705_v0  ;;  %v858_v7 = vadd.f32 %v857_v56, %v713_v2 }
 0x44c   :  { %v788_v57 = vpop.f32.mrf.mxu1  ;;  %v1174_v58 = vpop.f32.mrf.mxu0 }
 0x44d   :  { %v789_v59 = vadd.f32 %v788_v57, %v709_v54 }
 0x44f   :  { %v862_v60 = vmul.f32 0.5, %v789_v59 }
 0x451   :  { %v863_v61 = vmul.f32 1.442695, %v862_v60 }
 0x453   :  { %1184 = vpow2.f32 %v863_v61 }
 0x460   :  { %v1185_v3 = vpop.eup %1184 }
 0x461   :  { %v865_v6 = vmul.f32 %v1185_v3, %v861_v1 }
 0x463   :  { %v866_v8 = vadd.f32 %v865_v6, %v787_v4 }
 0x465   :  { %v867_v9 = vadd.f32 %v866_v8, %v858_v7 }
 0x467   :  { %868 = vst [vmem:[#allocation10] sm:$0xff] %v867_v9 }
 0x468   :  { %1277 = shalt.err (!%p1274_p10)
}
 0x469   :  { %878 = dma.vmem_to_hbm [thread:$0]  %s876_s16, 128, %s1620_s12, [#allocation4]  }
 0x46a   :  { %1292 = dma.done.wait [#allocation4], 128  }
 0x46b   :  { %1293 = vsyncadd [#allocation4], 4294967168 }
 0x46c   :  { %882 = vsyncpa [#allocation3], 1 }
 0x46d   :  { %883 = vsyncpa [#allocation6], 1 }
 0x46e   :  { %884 = vsyncpa [#allocation9], 1 }
 0x46f   :  { %885 = vsyncpa [#allocation4], 1 }

</bundles_post_ra>
